<compile_context>
chip_gen: v7x
topology: tpu7x:2x2x1
jax: 0.10.0
libtpu: 0.0.40
codegen_flags: <defaults>
</compile_context>

<pallas_src>
import functools
import math

import jax
import jax.numpy as jnp
from jax.experimental import pallas as pl
from jax.experimental.pallas import tpu as pltpu


def _round_up(n, m):
    return ((n + m - 1) // m) * m


def _pad_feature(n):
    # 128 lanes is optimal for v5e's 128x128 MXU; for wider layers align to
    # 256 so v6e/v7x 256x256 MXU tiles are fully occupied.
    return _round_up(n, 256) if n > 128 else 128


def _choose_batch_tiling(B, tb_req, sublane=16):
    """Pick (batch_tile, padded_batch); tile is a multiple of 16 (bf16-safe)."""
    b_min = _round_up(B, sublane)
    tb = max(sublane, min(_round_up(tb_req, sublane), b_min))
    # Shrink the tile if batch padding would waste more than ~half a tile
    # (e.g. B=600, tb=512 would otherwise pad to 1024 rows).
    while tb > 4 * sublane and _round_up(B, tb) - b_min >= tb // 2:
        tb = _round_up(tb // 2, sublane)
    b_pad = _round_up(B, tb)
    # v7x megacore: prefer >= 2 batch tiles so the "parallel" grid axis can be
    # sharded across both TensorCores (no effect on v5e / v6e).
    if b_pad // tb < 2 and b_pad >= 2 * sublane:
        tb = _round_up(b_pad // 2, sublane)
        b_pad = _round_up(B, tb)
    return tb, b_pad


# ----------------------------------------------------------------------------
# Fused kernel: whole MLP for one batch tile.
#   x_ref : (tb, F)   bf16  padded input activations
#   z_ref : (tb, Fz)  bf16  padded skip input
#   wy_ref: (n_layers, F, F)  bf16  main-path weights, (in, out) layout
#   wz_ref: (n_skip,  Fz, F)  bf16  COMPACT skip weights (skip layers only)
#   b_ref : (n_layers, 1, F)  f32   biases
#   o_ref : (tb, F)   f32   padded output of the last layer
# The layer loop is static (n_layers is small), so the skip branch and the
# layer->compact-skip-index mapping are resolved at trace time.
# ----------------------------------------------------------------------------
def _fused_mlp_kernel(x_ref, z_ref, wy_ref, wz_ref, b_ref, o_ref,
                      *, n_layers, skip_map):
    skip_to_compact = dict(skip_map)
    y = x_ref[...]                                        # bf16 (tb, F)
    for li in range(n_layers):                            # static, unrolled
        acc = jnp.dot(y, wy_ref[li], preferred_element_type=jnp.float32)
        si = skip_to_compact.get(li)
        if si is not None:
            # cat((y, z), -1) @ W  ==  y @ W[:H] + z @ W[H:]
            acc = acc + jnp.dot(z_ref[...], wz_ref[si],
                                preferred_element_type=jnp.float32)
        acc = acc + b_ref[li]                             # f32 (1, F) broadcast
        act = jnp.maximum(acc, 0.0)                       # f32 epilogue (VPU)
        if li == n_layers - 1:
            o_ref[...] = act.astype(o_ref.dtype)
        else:
            y = act.astype(jnp.bfloat16)                  # bf16 between layers


# ----------------------------------------------------------------------------
# Wrapper: pad+cast inputs, tile over batch only, slice the result.
# ----------------------------------------------------------------------------
def fused_mlp_forward(x, z, wy, wz, b, *, n_layers, skip_map, out_dim, tb=512):
    B = x.shape[0]
    F = wy.shape[2]          # padded activation width (mult. of 128/256)
    Fz = wz.shape[1]         # padded skip width
    n_skip_eff = wz.shape[0]

    tb, b_pad = _choose_batch_tiling(B, tb)

    # Pad fused with the bf16 cast: half the HBM bytes of an f32 pad copy.
    cdt = jnp.bfloat16
    xp = jnp.zeros((b_pad, F), cdt).at[:B, :x.shape[1]].set(x.astype(cdt))
    zp = jnp.zeros((b_pad, Fz), cdt).at[:B, :z.shape[1]].set(z.astype(cdt))

    kernel = functools.partial(_fused_mlp_kernel,
                               n_layers=n_layers, skip_map=skip_map)

    n_skip_used = len(skip_map)
    flops = 2 * b_pad * F * F * n_layers + 2 * b_pad * Fz * F * n_skip_used
    bytes_accessed = (xp.size * 2 + zp.size * 2 + wy.size * 2 + wz.size * 2
                      + b.size * 4 + b_pad * F * 4)
    cost = pl.CostEstimate(flops=flops, transcendentals=0,
                           bytes_accessed=bytes_accessed)

    weight_bytes = wy.size * 2 + wz.size * 2 + b.size * 4
    act_bytes = 2 * (tb * F * 2 + tb * Fz * 2) + 2 * (tb * F * 4)

    def build(single_buffer_weights):
        # Constant-index blocks gain nothing from double buffering.
        const_kwargs = ({"pipeline_mode": pl.Buffered(1)}
                        if single_buffer_weights else {})
        wbuf = 1 if single_buffer_weights else 2
        vmem_need = wbuf * weight_bytes + act_bytes
        # 64 MiB cap is safe on every generation (v7x physical VMEM is 64 MiB;
        # v5e/v6e have 128 MiB but a 16/32 MiB default scoped limit).
        vmem_limit = int(min(64 * 2**20, max(32 * 2**20, 2 * vmem_need)))
        return pl.pallas_call(
            kernel,
            out_shape=jax.ShapeDtypeStruct((b_pad, F), jnp.float32),
            grid=(b_pad // tb,),
            in_specs=[
                pl.BlockSpec((tb, F), lambda i: (i, 0)),
                pl.BlockSpec((tb, Fz), lambda i: (i, 0)),
                pl.BlockSpec((n_layers, F, F), lambda i: (0, 0, 0),
                             **const_kwargs),
                pl.BlockSpec((n_skip_eff, Fz, F), lambda i: (0, 0, 0),
                             **const_kwargs),
                pl.BlockSpec((n_layers, 1, F), lambda i: (0, 0, 0),
                             **const_kwargs),
            ],
            out_specs=pl.BlockSpec((tb, F), lambda i: (i, 0)),
            compiler_params=pltpu.CompilerParams(
                dimension_semantics=("parallel",),
                vmem_limit_bytes=vmem_limit),
            cost_estimate=cost,
        )

    try:
        out = build(True)(xp, zp, wy, wz, b)
    except Exception:
        # Fallback if this JAX build rejects single-buffered constant blocks:
        # identical semantics, default (double) buffering.
        out = build(False)(xp, zp, wy, wz, b)

    return out[:B, :out_dim].astype(x.dtype)


# ----------------------------------------------------------------------------
# Module: mirrors the PyTorch __init__ shapes / init; weights are stored
# pre-split (skip layers), pre-padded, stacked, and cast to bf16 for the MXU.
# (output_dim is accepted but unused, exactly like the reference module.)
# ----------------------------------------------------------------------------
class MLPWithInputSkipsPallas:
    def __init__(self, n_layers, input_dim, output_dim, skip_dim, hidden_dim,
                 input_skips, key):
        del output_dim  # unused in the reference module as well
        if 0 in set(input_skips):
            # The PyTorch reference builds layer 0 with dimin=input_dim but
            # would concatenate z in forward -> runtime shape error; reject
            # the invalid config up front instead of silently diverging.
            raise ValueError("input_skips must not contain layer 0")

        self.n_layers = n_layers
        self.hidden_dim = hidden_dim
        self.input_skips = frozenset(input_skips)

        F = _pad_feature(max(input_dim, hidden_dim))
        Fz = _pad_feature(skip_dim)
        self.F, self.Fz = F, Fz

        skip_in_range = sorted(li for li in self.input_skips
                               if 0 < li < n_layers)
        self.skip_map = tuple((li, si) for si, li in enumerate(skip_in_range))
        skip_idx = dict(self.skip_map)
        n_skip_eff = max(1, len(skip_in_range))   # keep >=1 for a valid spec

        wy = jnp.zeros((n_layers, F, F), jnp.float32)
        wz = jnp.zeros((n_skip_eff, Fz, F), jnp.float32)
        bb = jnp.zeros((n_layers, 1, F), jnp.float32)
        raw = []  # unpadded f32 (w, b) for the pure-JAX reference
        for li in range(n_layers):
            if li == 0:
                dimin, dimout = input_dim, hidden_dim
            elif li in self.input_skips:
                dimin, dimout = hidden_dim + skip_dim, hidden_dim
            else:
                dimin, dimout = hidden_dim, hidden_dim
            key, kw, kb = jax.random.split(key, 3)
            bound = 1.0 / math.sqrt(dimin)   # nn.Linear default init range
            # stored as (in, out) == PyTorch weight.T
            w_l = jax.random.uniform(kw, (dimin, dimout), jnp.float32,
                                     -bound, bound)
            b_l = jax.random.uniform(kb, (dimout,), jnp.float32, -bound, bound)
            raw.append((w_l, b_l))
            if li in skip_idx:
                wy = wy.at[li, :hidden_dim, :dimout].set(w_l[:hidden_dim])
                wz = wz.at[skip_idx[li], :skip_dim, :dimout].set(
                    w_l[hidden_dim:])
            else:
                wy = wy.at[li, :dimin, :dimout].set(w_l)
            bb = bb.at[li, 0, :dimout].set(b_l)

        # bf16 weights feed the MXU; f32 bias joins the f32 epilogue.
        self.wy = wy.astype(jnp.bfloat16)
        self.wz = wz.astype(jnp.bfloat16)
        self.b = bb
        self.raw_params = raw

    def __call__(self, x, z, *, tb=512):
        return fused_mlp_forward(
            x, z, self.wy, self.wz, self.b,
            n_layers=self.n_layers, skip_map=self.skip_map,
            out_dim=self.hidden_dim, tb=tb)

    # pure-JAX f32 reference for a correctness check
    def reference(self, x, z):
        y = x
        for li in range(self.n_layers):
            w, bl = self.raw_params[li]
            if li in self.input_skips:
                y = jnp.concatenate((y, z), axis=-1)
            y = jnp.maximum(y @ w + bl, 0.0)
        return y


if __name__ == "__main__":
    key = jax.random.PRNGKey(0)
    kparams, kx, kz = jax.random.split(key, 3)

    n_layers = 4
    input_dim = 16
    skip_dim = 16
    hidden_dim = 32
    output_dim = 32        # unused by the module's forward (signature parity)
    input_skips = (2,)
    batch = 8

    model = MLPWithInputSkipsPallas(n_layers, input_dim, output_dim, skip_dim,
                                    hidden_dim, input_skips, kparams)

    x = jax.random.normal(kx, (batch, input_dim), jnp.float32)
    z = jax.random.normal(kz, (batch, skip_dim), jnp.float32)

    out = model(x, z)
    jax.block_until_ready(out)

    ref = model.reference(x, z)
    assert out.shape == (batch, hidden_dim)
    # bf16 matmuls with f32 accumulation -> compare with a bf16-level tolerance.
    assert jnp.allclose(out, ref, atol=5e-2, rtol=5e-2), (
        float(jnp.max(jnp.abs(out - ref))))

    print("KERNEL_OK")
</pallas_src>

<mosaic_0001>
module attributes {stable_mosaic.version = 11 : i64} {
  func.func @_fused_mlp_kernel(%arg0: i32, %arg1: memref<16x128xbf16, #tpu.memory_space<vmem>>, %arg2: memref<16x128xbf16, #tpu.memory_space<vmem>>, %arg3: memref<4x128x128xbf16, #tpu.memory_space<vmem>>, %arg4: memref<1x128x128xbf16, #tpu.memory_space<vmem>>, %arg5: memref<4x1x128xf32, #tpu.memory_space<vmem>>, %arg6: memref<16x128xf32, #tpu.memory_space<vmem>>) attributes {dimension_semantics = [#tpu.dimension_semantics<parallel>], iteration_bounds = array<i64: 1>, scalar_prefetch = 0 : i64, scratch_operands = 0 : i64, tpu.core_type = #tpu.core_type<tc>, window_params = [{transform_indices = @transform_0, window_bounds = array<i64: 16, 128>}, {transform_indices = @transform_1, window_bounds = array<i64: 16, 128>}, {pipeline_mode = #tpu.pipeline_mode<synchronous>, transform_indices = @transform_2, window_bounds = array<i64: 4, 128, 128>}, {pipeline_mode = #tpu.pipeline_mode<synchronous>, transform_indices = @transform_3, window_bounds = array<i64: 1, 128, 128>}, {pipeline_mode = #tpu.pipeline_mode<synchronous>, transform_indices = @transform_4, window_bounds = array<i64: 4, 1, 128>}, {transform_indices = @transform_5, window_bounds = array<i64: 16, 128>}]} {
    %c0 = arith.constant 0 : index
    %c0_0 = arith.constant 0 : index
    %0 = vector.load %arg1[%c0, %c0_0] : memref<16x128xbf16, #tpu.memory_space<vmem>>, vector<16x128xbf16>
    %c0_1 = arith.constant 0 : index
    %c0_2 = arith.constant 0 : index
    %c0_3 = arith.constant 0 : index
    %1 = vector.load %arg3[%c0_1, %c0_2, %c0_3] : memref<4x128x128xbf16, #tpu.memory_space<vmem>>, vector<1x128x128xbf16>
    %2 = vector.shape_cast %1 : vector<1x128x128xbf16> to vector<128x128xbf16>
    %cst = arith.constant dense<0.000000e+00> : vector<16x128xf32>
    %3 = tpu.matmul %0, %2, %cst {dimension_numbers = #tpu.dot_dimension_numbers<[1], [0], [0], [1], [0, 0, 1, 1], [], []>} : vector<16x128xbf16>, vector<128x128xbf16>, vector<16x128xf32> -> vector<16x128xf32>
    %c0_4 = arith.constant 0 : index
    %c0_5 = arith.constant 0 : index
    %c0_6 = arith.constant 0 : index
    %4 = vector.load %arg5[%c0_4, %c0_5, %c0_6] : memref<4x1x128xf32, #tpu.memory_space<vmem>>, vector<1x1x128xf32>
    %5 = vector.shape_cast %4 : vector<1x1x128xf32> to vector<1x128xf32>
    %6 = vector.broadcast %5 : vector<1x128xf32> to vector<16x128xf32>
    %7 = arith.addf %3, %6 : vector<16x128xf32>
    %cst_7 = arith.constant 0.000000e+00 : f32
    %8 = vector.broadcast %cst_7 : f32 to vector<16x128xf32>
    %9 = arith.maximumf %7, %8 : vector<16x128xf32>
    %10 = arith.truncf %9 : vector<16x128xf32> to vector<16x128xbf16>
    %c1 = arith.constant 1 : index
    %c0_8 = arith.constant 0 : index
    %c0_9 = arith.constant 0 : index
    %11 = vector.load %arg3[%c1, %c0_8, %c0_9] : memref<4x128x128xbf16, #tpu.memory_space<vmem>>, vector<1x128x128xbf16>
    %12 = vector.shape_cast %11 : vector<1x128x128xbf16> to vector<128x128xbf16>
    %cst_10 = arith.constant dense<0.000000e+00> : vector<16x128xf32>
    %13 = tpu.matmul %10, %12, %cst_10 {dimension_numbers = #tpu.dot_dimension_numbers<[1], [0], [0], [1], [0, 0, 1, 1], [], []>} : vector<16x128xbf16>, vector<128x128xbf16>, vector<16x128xf32> -> vector<16x128xf32>
    %c1_11 = arith.constant 1 : index
    %c0_12 = arith.constant 0 : index
    %c0_13 = arith.constant 0 : index
    %14 = vector.load %arg5[%c1_11, %c0_12, %c0_13] : memref<4x1x128xf32, #tpu.memory_space<vmem>>, vector<1x1x128xf32>
    %15 = vector.shape_cast %14 : vector<1x1x128xf32> to vector<1x128xf32>
    %16 = vector.broadcast %15 : vector<1x128xf32> to vector<16x128xf32>
    %17 = arith.addf %13, %16 : vector<16x128xf32>
    %cst_14 = arith.constant 0.000000e+00 : f32
    %18 = vector.broadcast %cst_14 : f32 to vector<16x128xf32>
    %19 = arith.maximumf %17, %18 : vector<16x128xf32>
    %20 = arith.truncf %19 : vector<16x128xf32> to vector<16x128xbf16>
    %c2 = arith.constant 2 : index
    %c0_15 = arith.constant 0 : index
    %c0_16 = arith.constant 0 : index
    %21 = vector.load %arg3[%c2, %c0_15, %c0_16] : memref<4x128x128xbf16, #tpu.memory_space<vmem>>, vector<1x128x128xbf16>
    %22 = vector.shape_cast %21 : vector<1x128x128xbf16> to vector<128x128xbf16>
    %cst_17 = arith.constant dense<0.000000e+00> : vector<16x128xf32>
    %23 = tpu.matmul %20, %22, %cst_17 {dimension_numbers = #tpu.dot_dimension_numbers<[1], [0], [0], [1], [0, 0, 1, 1], [], []>} : vector<16x128xbf16>, vector<128x128xbf16>, vector<16x128xf32> -> vector<16x128xf32>
    %c0_18 = arith.constant 0 : index
    %c0_19 = arith.constant 0 : index
    %24 = vector.load %arg2[%c0_18, %c0_19] : memref<16x128xbf16, #tpu.memory_space<vmem>>, vector<16x128xbf16>
    %c0_20 = arith.constant 0 : index
    %c0_21 = arith.constant 0 : index
    %c0_22 = arith.constant 0 : index
    %25 = vector.load %arg4[%c0_20, %c0_21, %c0_22] : memref<1x128x128xbf16, #tpu.memory_space<vmem>>, vector<1x128x128xbf16>
    %26 = vector.shape_cast %25 : vector<1x128x128xbf16> to vector<128x128xbf16>
    %cst_23 = arith.constant dense<0.000000e+00> : vector<16x128xf32>
    %27 = tpu.matmul %24, %26, %cst_23 {dimension_numbers = #tpu.dot_dimension_numbers<[1], [0], [0], [1], [0, 0, 1, 1], [], []>} : vector<16x128xbf16>, vector<128x128xbf16>, vector<16x128xf32> -> vector<16x128xf32>
    %28 = arith.addf %23, %27 : vector<16x128xf32>
    %c2_24 = arith.constant 2 : index
    %c0_25 = arith.constant 0 : index
    %c0_26 = arith.constant 0 : index
    %29 = vector.load %arg5[%c2_24, %c0_25, %c0_26] : memref<4x1x128xf32, #tpu.memory_space<vmem>>, vector<1x1x128xf32>
    %30 = vector.shape_cast %29 : vector<1x1x128xf32> to vector<1x128xf32>
    %31 = vector.broadcast %30 : vector<1x128xf32> to vector<16x128xf32>
    %32 = arith.addf %28, %31 : vector<16x128xf32>
    %cst_27 = arith.constant 0.000000e+00 : f32
    %33 = vector.broadcast %cst_27 : f32 to vector<16x128xf32>
    %34 = arith.maximumf %32, %33 : vector<16x128xf32>
    %35 = arith.truncf %34 : vector<16x128xf32> to vector<16x128xbf16>
    %c3 = arith.constant 3 : index
    %c0_28 = arith.constant 0 : index
    %c0_29 = arith.constant 0 : index
    %36 = vector.load %arg3[%c3, %c0_28, %c0_29] : memref<4x128x128xbf16, #tpu.memory_space<vmem>>, vector<1x128x128xbf16>
    %37 = vector.shape_cast %36 : vector<1x128x128xbf16> to vector<128x128xbf16>
    %cst_30 = arith.constant dense<0.000000e+00> : vector<16x128xf32>
    %38 = tpu.matmul %35, %37, %cst_30 {dimension_numbers = #tpu.dot_dimension_numbers<[1], [0], [0], [1], [0, 0, 1, 1], [], []>} : vector<16x128xbf16>, vector<128x128xbf16>, vector<16x128xf32> -> vector<16x128xf32>
    %c3_31 = arith.constant 3 : index
    %c0_32 = arith.constant 0 : index
    %c0_33 = arith.constant 0 : index
    %39 = vector.load %arg5[%c3_31, %c0_32, %c0_33] : memref<4x1x128xf32, #tpu.memory_space<vmem>>, vector<1x1x128xf32>
    %40 = vector.shape_cast %39 : vector<1x1x128xf32> to vector<1x128xf32>
    %41 = vector.broadcast %40 : vector<1x128xf32> to vector<16x128xf32>
    %42 = arith.addf %38, %41 : vector<16x128xf32>
    %cst_34 = arith.constant 0.000000e+00 : f32
    %43 = vector.broadcast %cst_34 : f32 to vector<16x128xf32>
    %44 = arith.maximumf %42, %43 : vector<16x128xf32>
    %c0_35 = arith.constant 0 : index
    %c0_36 = arith.constant 0 : index
    %45 = vector.load %arg6[%c0_35, %c0_36] : memref<16x128xf32, #tpu.memory_space<vmem>>, vector<16x128xf32>
    tpu.vector_store %arg6[%c0_35, %c0_36], %44 {strides = array<i32>} : memref<16x128xf32, #tpu.memory_space<vmem>>, vector<16x128xf32>,
    return
  }
  func.func @transform_0(%arg0: i32) -> (i32, i32) {
    %c0_i32 = arith.constant 0 : i32
    %c0_i32_0 = arith.constant 0 : i32
    return %arg0, %c0_i32 : i32, i32
  }
  func.func @transform_1(%arg0: i32) -> (i32, i32) {
    %c0_i32 = arith.constant 0 : i32
    %c0_i32_0 = arith.constant 0 : i32
    return %arg0, %c0_i32 : i32, i32
  }
  func.func @transform_2(%arg0: i32) -> (i32, i32, i32) {
    %c0_i32 = arith.constant 0 : i32
    %c0_i32_0 = arith.constant 0 : i32
    %c0_i32_1 = arith.constant 0 : i32
    %c0_i32_2 = arith.constant 0 : i32
    return %c0_i32, %c0_i32_0, %c0_i32_1 : i32, i32, i32
  }
  func.func @transform_3(%arg0: i32) -> (i32, i32, i32) {
    %c0_i32 = arith.constant 0 : i32
    %c0_i32_0 = arith.constant 0 : i32
    %c0_i32_1 = arith.constant 0 : i32
    %c0_i32_2 = arith.constant 0 : i32
    return %c0_i32, %c0_i32_0, %c0_i32_1 : i32, i32, i32
  }
  func.func @transform_4(%arg0: i32) -> (i32, i32, i32) {
    %c0_i32 = arith.constant 0 : i32
    %c0_i32_0 = arith.constant 0 : i32
    %c0_i32_1 = arith.constant 0 : i32
    %c0_i32_2 = arith.constant 0 : i32
    return %c0_i32, %c0_i32_0, %c0_i32_1 : i32, i32, i32
  }
  func.func @transform_5(%arg0: i32) -> (i32, i32) {
    %c0_i32 = arith.constant 0 : i32
    %c0_i32_0 = arith.constant 0 : i32
    return %arg0, %c0_i32 : i32, i32
  }
}

module attributes {stable_mosaic.version = 11 : i64} {
  func.func @_fused_mlp_kernel(%arg0: i32, %arg1: memref<16x128xbf16, #tpu.memory_space<vmem>>, %arg2: memref<16x128xbf16, #tpu.memory_space<vmem>>, %arg3: memref<4x128x128xbf16, #tpu.memory_space<vmem>>, %arg4: memref<1x128x128xbf16, #tpu.memory_space<vmem>>, %arg5: memref<4x1x128xf32, #tpu.memory_space<vmem>>, %arg6: memref<16x128xf32, #tpu.memory_space<vmem>>) attributes {dimension_semantics = [#tpu.dimension_semantics<parallel>], iteration_bounds = array<i64: 1>, scalar_prefetch = 0 : i64, scratch_operands = 0 : i64, tpu.core_type = #tpu.core_type<tc>, window_params = [{transform_indices = @transform_0, window_bounds = array<i64: 16, 128>}, {transform_indices = @transform_1, window_bounds = array<i64: 16, 128>}, {pipeline_mode = #tpu.pipeline_mode<synchronous>, transform_indices = @transform_2, window_bounds = array<i64: 4, 128, 128>}, {pipeline_mode = #tpu.pipeline_mode<synchronous>, transform_indices = @transform_3, window_bounds = array<i64: 1, 128, 128>}, {pipeline_mode = #tpu.pipeline_mode<synchronous>, transform_indices = @transform_4, window_bounds = array<i64: 4, 1, 128>}, {transform_indices = @transform_5, window_bounds = array<i64: 16, 128>}]} {
    %c0 = arith.constant 0 : index
    %c0_0 = arith.constant 0 : index
    %0 = vector.load %arg1[%c0, %c0_0] : memref<16x128xbf16, #tpu.memory_space<vmem>>, vector<16x128xbf16>
    %c0_1 = arith.constant 0 : index
    %c0_2 = arith.constant 0 : index
    %c0_3 = arith.constant 0 : index
    %1 = vector.load %arg3[%c0_1, %c0_2, %c0_3] : memref<4x128x128xbf16, #tpu.memory_space<vmem>>, vector<1x128x128xbf16>
    %2 = vector.shape_cast %1 : vector<1x128x128xbf16> to vector<128x128xbf16>
    %cst = arith.constant dense<0.000000e+00> : vector<16x128xf32>
    %3 = tpu.matmul %0, %2, %cst {dimension_numbers = #tpu.dot_dimension_numbers<[1], [0], [0], [1], [0, 0, 1, 1], [], []>} : vector<16x128xbf16>, vector<128x128xbf16>, vector<16x128xf32> -> vector<16x128xf32>
    %c0_4 = arith.constant 0 : index
    %c0_5 = arith.constant 0 : index
    %c0_6 = arith.constant 0 : index
    %4 = vector.load %arg5[%c0_4, %c0_5, %c0_6] : memref<4x1x128xf32, #tpu.memory_space<vmem>>, vector<1x1x128xf32>
    %5 = vector.shape_cast %4 : vector<1x1x128xf32> to vector<1x128xf32>
    %6 = vector.broadcast %5 : vector<1x128xf32> to vector<16x128xf32>
    %7 = arith.addf %3, %6 : vector<16x128xf32>
    %cst_7 = arith.constant 0.000000e+00 : f32
    %8 = vector.broadcast %cst_7 : f32 to vector<16x128xf32>
    %9 = arith.maximumf %7, %8 : vector<16x128xf32>
    %10 = arith.truncf %9 : vector<16x128xf32> to vector<16x128xbf16>
    %c1 = arith.constant 1 : index
    %c0_8 = arith.constant 0 : index
    %c0_9 = arith.constant 0 : index
    %11 = vector.load %arg3[%c1, %c0_8, %c0_9] : memref<4x128x128xbf16, #tpu.memory_space<vmem>>, vector<1x128x128xbf16>
    %12 = vector.shape_cast %11 : vector<1x128x128xbf16> to vector<128x128xbf16>
    %cst_10 = arith.constant dense<0.000000e+00> : vector<16x128xf32>
    %13 = tpu.matmul %10, %12, %cst_10 {dimension_numbers = #tpu.dot_dimension_numbers<[1], [0], [0], [1], [0, 0, 1, 1], [], []>} : vector<16x128xbf16>, vector<128x128xbf16>, vector<16x128xf32> -> vector<16x128xf32>
    %c1_11 = arith.constant 1 : index
    %c0_12 = arith.constant 0 : index
    %c0_13 = arith.constant 0 : index
    %14 = vector.load %arg5[%c1_11, %c0_12, %c0_13] : memref<4x1x128xf32, #tpu.memory_space<vmem>>, vector<1x1x128xf32>
    %15 = vector.shape_cast %14 : vector<1x1x128xf32> to vector<1x128xf32>
    %16 = vector.broadcast %15 : vector<1x128xf32> to vector<16x128xf32>
    %17 = arith.addf %13, %16 : vector<16x128xf32>
    %cst_14 = arith.constant 0.000000e+00 : f32
    %18 = vector.broadcast %cst_14 : f32 to vector<16x128xf32>
    %19 = arith.maximumf %17, %18 : vector<16x128xf32>
    %20 = arith.truncf %19 : vector<16x128xf32> to vector<16x128xbf16>
    %c2 = arith.constant 2 : index
    %c0_15 = arith.constant 0 : index
    %c0_16 = arith.constant 0 : index
    %21 = vector.load %arg3[%c2, %c0_15, %c0_16] : memref<4x128x128xbf16, #tpu.memory_space<vmem>>, vector<1x128x128xbf16>
    %22 = vector.shape_cast %21 : vector<1x128x128xbf16> to vector<128x128xbf16>
    %cst_17 = arith.constant dense<0.000000e+00> : vector<16x128xf32>
    %23 = tpu.matmul %20, %22, %cst_17 {dimension_numbers = #tpu.dot_dimension_numbers<[1], [0], [0], [1], [0, 0, 1, 1], [], []>} : vector<16x128xbf16>, vector<128x128xbf16>, vector<16x128xf32> -> vector<16x128xf32>
    %c0_18 = arith.constant 0 : index
    %c0_19 = arith.constant 0 : index
    %24 = vector.load %arg2[%c0_18, %c0_19] : memref<16x128xbf16, #tpu.memory_space<vmem>>, vector<16x128xbf16>
    %c0_20 = arith.constant 0 : index
    %c0_21 = arith.constant 0 : index
    %c0_22 = arith.constant 0 : index
    %25 = vector.load %arg4[%c0_20, %c0_21, %c0_22] : memref<1x128x128xbf16, #tpu.memory_space<vmem>>, vector<1x128x128xbf16>
    %26 = vector.shape_cast %25 : vector<1x128x128xbf16> to vector<128x128xbf16>
    %cst_23 = arith.constant dense<0.000000e+00> : vector<16x128xf32>
    %27 = tpu.matmul %24, %26, %cst_23 {dimension_numbers = #tpu.dot_dimension_numbers<[1], [0], [0], [1], [0, 0, 1, 1], [], []>} : vector<16x128xbf16>, vector<128x128xbf16>, vector<16x128xf32> -> vector<16x128xf32>
    %28 = arith.addf %23, %27 : vector<16x128xf32>
    %c2_24 = arith.constant 2 : index
    %c0_25 = arith.constant 0 : index
    %c0_26 = arith.constant 0 : index
    %29 = vector.load %arg5[%c2_24, %c0_25, %c0_26] : memref<4x1x128xf32, #tpu.memory_space<vmem>>, vector<1x1x128xf32>
    %30 = vector.shape_cast %29 : vector<1x1x128xf32> to vector<1x128xf32>
    %31 = vector.broadcast %30 : vector<1x128xf32> to vector<16x128xf32>
    %32 = arith.addf %28, %31 : vector<16x128xf32>
    %cst_27 = arith.constant 0.000000e+00 : f32
    %33 = vector.broadcast %cst_27 : f32 to vector<16x128xf32>
    %34 = arith.maximumf %32, %33 : vector<16x128xf32>
    %35 = arith.truncf %34 : vector<16x128xf32> to vector<16x128xbf16>
    %c3 = arith.constant 3 : index
    %c0_28 = arith.constant 0 : index
    %c0_29 = arith.constant 0 : index
    %36 = vector.load %arg3[%c3, %c0_28, %c0_29] : memref<4x128x128xbf16, #tpu.memory_space<vmem>>, vector<1x128x128xbf16>
    %37 = vector.shape_cast %36 : vector<1x128x128xbf16> to vector<128x128xbf16>
    %cst_30 = arith.constant dense<0.000000e+00> : vector<16x128xf32>
    %38 = tpu.matmul %35, %37, %cst_30 {dimension_numbers = #tpu.dot_dimension_numbers<[1], [0], [0], [1], [0, 0, 1, 1], [], []>} : vector<16x128xbf16>, vector<128x128xbf16>, vector<16x128xf32> -> vector<16x128xf32>
    %c3_31 = arith.constant 3 : index
    %c0_32 = arith.constant 0 : index
    %c0_33 = arith.constant 0 : index
    %39 = vector.load %arg5[%c3_31, %c0_32, %c0_33] : memref<4x1x128xf32, #tpu.memory_space<vmem>>, vector<1x1x128xf32>
    %40 = vector.shape_cast %39 : vector<1x1x128xf32> to vector<1x128xf32>
    %41 = vector.broadcast %40 : vector<1x128xf32> to vector<16x128xf32>
    %42 = arith.addf %38, %41 : vector<16x128xf32>
    %cst_34 = arith.constant 0.000000e+00 : f32
    %43 = vector.broadcast %cst_34 : f32 to vector<16x128xf32>
    %44 = arith.maximumf %42, %43 : vector<16x128xf32>
    %c0_35 = arith.constant 0 : index
    %c0_36 = arith.constant 0 : index
    %45 = vector.load %arg6[%c0_35, %c0_36] : memref<16x128xf32, #tpu.memory_space<vmem>>, vector<16x128xf32>
    tpu.vector_store %arg6[%c0_35, %c0_36], %44 {strides = array<i32>} : memref<16x128xf32, #tpu.memory_space<vmem>>, vector<16x128xf32>,
    return
  }
  func.func @transform_0(%arg0: i32) -> (i32, i32) {
    %c0_i32 = arith.constant 0 : i32
    %c0_i32_0 = arith.constant 0 : i32
    return %arg0, %c0_i32 : i32, i32
  }
  func.func @transform_1(%arg0: i32) -> (i32, i32) {
    %c0_i32 = arith.constant 0 : i32
    %c0_i32_0 = arith.constant 0 : i32
    return %arg0, %c0_i32 : i32, i32
  }
  func.func @transform_2(%arg0: i32) -> (i32, i32, i32) {
    %c0_i32 = arith.constant 0 : i32
    %c0_i32_0 = arith.constant 0 : i32
    %c0_i32_1 = arith.constant 0 : i32
    %c0_i32_2 = arith.constant 0 : i32
    return %c0_i32, %c0_i32_0, %c0_i32_1 : i32, i32, i32
  }
  func.func @transform_3(%arg0: i32) -> (i32, i32, i32) {
    %c0_i32 = arith.constant 0 : i32
    %c0_i32_0 = arith.constant 0 : i32
    %c0_i32_1 = arith.constant 0 : i32
    %c0_i32_2 = arith.constant 0 : i32
    return %c0_i32, %c0_i32_0, %c0_i32_1 : i32, i32, i32
  }
  func.func @transform_4(%arg0: i32) -> (i32, i32, i32) {
    %c0_i32 = arith.constant 0 : i32
    %c0_i32_0 = arith.constant 0 : i32
    %c0_i32_1 = arith.constant 0 : i32
    %c0_i32_2 = arith.constant 0 : i32
    return %c0_i32, %c0_i32_0, %c0_i32_1 : i32, i32, i32
  }
  func.func @transform_5(%arg0: i32) -> (i32, i32) {
    %c0_i32 = arith.constant 0 : i32
    %c0_i32_0 = arith.constant 0 : i32
    return %arg0, %c0_i32 : i32, i32
  }
}

</mosaic_0001>

<bundles_post_ra>
// kernel: tpu_custom_call.1
= control target key start
LH: loop header
LB: loop body
LE: loop exit
PB: predicated region body
PF: predicated region fallthrough
CT: control target
= control target key end

     0   :  { %10 = vsyncpa [#allocation3], 0  ;;  %s1240_s0 = inlined_call_operand.hbm [shape: bf16[16,128], index: 0, kind: input, shape index: {}]   ;;  %s1241_s1 = inlined_call_operand.hbm [shape: bf16[16,128], index: 1, kind: input, shape index: {}]   ;;  %s1242_s2 = inlined_call_operand.hbm [shape: bf16[4,128,128], index: 2, kind: input, shape index: {}]   ;;  %s1243_s3 = inlined_call_operand.hbm [shape: bf16[1,128,128], index: 3, kind: input, shape index: {}]   ;;  %s1244_s4 = inlined_call_operand.vmem [shape: f32[4,1,128], index: 4, kind: input, shape index: {}]   ;;  %s1245_s5 = inlined_call_operand.hbm [shape: f32[16,128], index: 5, kind: output, shape index: {}]  }
   0x1   :  { %11 = vsyncpa [#allocation6], 0 }
   0x2   :  { %12 = vsyncpa [#allocation9], 0 }
   0x3   :  { %13 = vsyncpa [#allocation4], 0  ;;  %s1051_s18 = smov [#allocation5]   ;;  %s1052_s20 = smov [#allocation2]  }
   0x4   :  { %s31_s19 = sshll.u32 %s1051_s18, 4  ;;  %s19_s21 = sshll.u32 %s1052_s20, 4  ;;  %s32_s19 = int_to_ptr.vmem [resolvable:$true] %s31_s19  ;;  %s1092_s21 = int_to_ptr.vmem [resolvable:$true] %s19_s21 }
   0x5   :  { %s933_s24 = scalar_lea.hbm %s1241_s1, 128 }
   0x6   :  { %p934_p0 = scmp.ne.s32.totalorder %s1241_s1, %s933_s24  ;;  %p937_p1 = scmp.lt.u32.totalorder %s933_s24, %s1241_s1 }
   0x8   :  { %p939_p2 = pnand %p937_p1, %p934_p0 }
   0xa   :  { %942 = shalt.err (!%p939_p2)
}
   0xb   :  { %s943_s29 = scalar_lea.vmem %s32_s19, 128  ;;  %p948_p4 = scmp.lt.s32.totalorder %s32_s19, %s32_s19 }
   0xc   :  { %p944_p3 = scmp.ne.s32.totalorder %s32_s19, %s943_s29  ;;  %p949_p5 = scmp.lt.s32.totalorder %s943_s29, %s943_s29 }
   0xe   :  { %p950_p6 = por %p949_p5, %p948_p4 }
  0x10   :  { %p951_p7 = pnand %p950_p6, %p944_p3 }
  0x12   :  { %954 = shalt.err (!%p951_p7)
}
  0x13   :  { %s1053_s30 = smov 64   ;;  %s1054_s6 = smov 4  }
  0x14   :  { %37 = dma.hbm_to_vmem [thread:$0]  %s1241_s1, 128, %s32_s19, [#allocation6], %s1053_s30, %s1053_s30, %s1054_s6  }
  0x15   :  { %s955_s11 = scalar_lea.hbm %s1240_s0, 128 }
  0x16   :  { %p956_p8 = scmp.ne.s32.totalorder %s1240_s0, %s955_s11  ;;  %p959_p9 = scmp.lt.u32.totalorder %s955_s11, %s1240_s0 }
  0x18   :  { %p961_p10 = pnand %p959_p9, %p956_p8 }
  0x1a   :  { %964 = shalt.err (!%p961_p10)
}
  0x1b   :  { %s965_s16 = scalar_lea.vmem %s1092_s21, 128  ;;  %p970_p12 = scmp.lt.s32.totalorder %s1092_s21, %s1092_s21 }
  0x1c   :  { %p966_p11 = scmp.ne.s32.totalorder %s1092_s21, %s965_s16  ;;  %p971_p13 = scmp.lt.s32.totalorder %s965_s16, %s965_s16 }
  0x1e   :  { %p972_p0 = por %p971_p13, %p970_p12 }
  0x20   :  { %p973_p1 = pnand %p972_p0, %p966_p11 }
  0x22   :  { %976 = shalt.err (!%p973_p1)
}
  0x23   :  { %25 = dma.hbm_to_vmem [thread:$0]  %s1240_s0, 128, %s1092_s21, [#allocation3], %s1053_s30, %s1053_s30, %s1054_s6  }
  0x24   :  { %s1055_s18 = smov [#allocation7]   ;;  %s1056_s20 = smov [#allocation8]  }
  0x25   :  { %s43_s19 = sshll.u32 %s1055_s18, 4  ;;  %s55_s22 = sshll.u32 %s1056_s20, 4  ;;  %s44_s19 = int_to_ptr.vmem [resolvable:$true] %s43_s19  ;;  %s1129_s22 = int_to_ptr.vmem [resolvable:$true] %s55_s22 }
  0x26   :  { %s977_s25 = scalar_lea.hbm %s1242_s2, 4096 }
  0x27   :  { %p978_p2 = scmp.ne.s32.totalorder %s1242_s2, %s977_s25  ;;  %p981_p3 = scmp.lt.u32.totalorder %s977_s25, %s1242_s2 }
  0x29   :  { %p983_p4 = pnand %p981_p3, %p978_p2 }
  0x2b   :  { %986 = shalt.err (!%p983_p4)
}
  0x2c   :  { %s987_s0 = scalar_lea.vmem %s44_s19, 4096  ;;  %p992_p6 = scmp.lt.s32.totalorder %s44_s19, %s44_s19 }
  0x2d   :  { %p988_p5 = scmp.ne.s32.totalorder %s44_s19, %s987_s0  ;;  %p993_p7 = scmp.lt.s32.totalorder %s987_s0, %s987_s0 }
  0x2f   :  { %p994_p8 = por %p993_p7, %p992_p6 }
  0x31   :  { %p995_p9 = pnand %p994_p8, %p988_p5 }
  0x33   :  { %998 = shalt.err (!%p995_p9)
}
  0x34   :  { %49 = dma.hbm_to_vmem [thread:$0]  %s1242_s2, 4096, %s44_s19, [#allocation6], %s1053_s30, %s1053_s30, %s1054_s6  }
  0x35   :  { %s999_s10 = scalar_lea.hbm %s1243_s3, 1024 }
  0x36   :  { %p1000_p10 = scmp.ne.s32.totalorder %s1243_s3, %s999_s10  ;;  %p1003_p11 = scmp.lt.u32.totalorder %s999_s10, %s1243_s3 }
  0x38   :  { %p1005_p12 = pnand %p1003_p11, %p1000_p10 }
  0x3a   :  { %1008 = shalt.err (!%p1005_p12)
}
  0x3b   :  { %s1009_s15 = scalar_lea.vmem %s1129_s22, 1024  ;;  %p1014_p0 = scmp.lt.s32.totalorder %s1129_s22, %s1129_s22 }
  0x3c   :  { %p1010_p13 = scmp.ne.s32.totalorder %s1129_s22, %s1009_s15  ;;  %p1015_p1 = scmp.lt.s32.totalorder %s1009_s15, %s1009_s15 }
  0x3e   :  { %p1016_p2 = por %p1015_p1, %p1014_p0 }
  0x40   :  { %p1017_p3 = pnand %p1016_p2, %p1010_p13 }
  0x42   :  { %1020 = shalt.err (!%p1017_p3)
}
  0x43   :  { %61 = dma.hbm_to_vmem [thread:$0]  %s1243_s3, 1024, %s1129_s22, [#allocation9], %s1053_s30, %s1053_s30, %s1054_s6  }
  0x44   :  { %1043 = dma.done.wait [#allocation3], 128  }
  0x45   :  { %1044 = vsyncadd [#allocation3], 4294967168 }
  0x46   :  { %1045 = dma.done.wait [#allocation6], 4224  }
  0x47   :  { %1046 = vsyncadd [#allocation6], 4294963072 }
  0x48   :  { %1047 = dma.done.wait [#allocation9], 1024  }
  0x49   :  { %1048 = vsyncadd [#allocation9], 4294966272  ;;  %v1057_v0 = vmov 0.0   ;;  %vm1058_vm0 = vmmov 0   ;;  %v891_v1 = vld [vmem:[#allocation7] sm:$0xff]   ;;  %v892_v2 = vld [vmem:[#allocation7 + $0x8] sm:$0xff]  }
  0x4a   :  { %780 = vmatprep.subr.bf16.mxu0 %v1057_v0  ;;  %796 = vmatprep.mubr.msk.bf16.mxu0 %vm1058_vm0, %v1057_v0  ;;  %v893_v3 = vld [vmem:[#allocation7 + $0x10] sm:$0xff]   ;;  %v900_v4 = vld [vmem:[#allocation7 + $0x40] sm:$0xff]   ;;  %v894_v5 = vld [vmem:[#allocation7 + $0x18] sm:$0xff]   ;;  %s1059_s22 = smov [#allocation10]  }
  0x4b   :  { %800 = vmatprep.subr.bf16.mxu1 %v1057_v0  ;;  %816 = vmatprep.mubr.msk.bf16.mxu1 %vm1058_vm0, %v1057_v0  ;;  %v901_v6 = vld [vmem:[#allocation7 + $0x48] sm:$0xff]   ;;  %v895_v7 = vld [vmem:[#allocation7 + $0x20] sm:$0xff]   ;;  %v902_v8 = vld [vmem:[#allocation7 + $0x50] sm:$0xff]   ;;  %s672_s23 = sshll.u32 %s1059_s22, 4  ;;  %s673_s23 = int_to_ptr.vmem [resolvable:$true] %s672_s23 }
  0x4c   :  { %781 = vmatpush3.bf16.msra.mxu0 %v891_v1  ;;  %801 = vmatpush3.bf16.msra.mxu1 %v900_v4  ;;  %v896_v9 = vld [vmem:[#allocation7 + $0x28] sm:$0xff]   ;;  %v903_v10 = vld [vmem:[#allocation7 + $0x58] sm:$0xff]   ;;  %v897_v11 = vld [vmem:[#allocation7 + $0x30] sm:$0xff]   ;;  %s1021_s24 = scalar_lea.vmem %s673_s23, 256  ;;  %p1026_p5 = scmp.lt.s32.totalorder %s673_s23, %s673_s23 }
  0x4d   :  { %782 = vmatprep.subr.bf16.mxu0 %v1057_v0  ;;  %802 = vmatprep.subr.bf16.mxu1 %v1057_v0  ;;  %v904_v12 = vld [vmem:[#allocation7 + $0x60] sm:$0xff]   ;;  %v898_v13 = vld [vmem:[#allocation7 + $0x38] sm:$0xff]   ;;  %v905_v14 = vld [vmem:[#allocation7 + $0x68] sm:$0xff]   ;;  %p1022_p4 = scmp.ne.s32.totalorder %s673_s23, %s1021_s24  ;;  %p1027_p6 = scmp.lt.s32.totalorder %s1021_s24, %s1021_s24 }
  0x4e   :  { %v899_v15 = vld [vmem:[#allocation2] sm:$0xff]   ;;  %v907_v17 = vld [vmem:[#allocation7 + $0x78] sm:$0xff]   ;;  %v908_v18 = vld [vmem:[#allocation8] sm:$0xff]  }
  0x4f   :  { %v906_v16 = vld [vmem:[#allocation7 + $0x70] sm:$0xff]   ;;  %v910_v19 = vld [vmem:[#allocation8 + $0x8] sm:$0xff]   ;;  %v914_v21 = vld [vmem:[#allocation8 + $0x18] sm:$0xff]   ;;  %p1028_p7 = por %p1027_p6, %p1026_p5 }
  0x50   :  { %783 = vmatpush3.bf16.msra.mxu0 %v892_v2  ;;  %803 = vmatpush3.bf16.msra.mxu1 %v901_v6  ;;  %v912_v20 = vld [vmem:[#allocation8 + $0x10] sm:$0xff]   ;;  %v916_v22 = vld [vmem:[#allocation8 + $0x20] sm:$0xff]   ;;  %v918_v23 = vld [vmem:[#allocation8 + $0x28] sm:$0xff]  }
  0x51   :  { %784 = vmatprep.subr.bf16.mxu0 %v1057_v0  ;;  %804 = vmatprep.subr.bf16.mxu1 %v1057_v0  ;;  %v920_v24 = vld [vmem:[#allocation8 + $0x30] sm:$0xff]   ;;  %v909_v34 = vld [vmem:[#allocation7 + $0x80] sm:$0xff]   ;;  %v911_v36 = vld [vmem:[#allocation7 + $0x88] sm:$0xff]   ;;  %p1029_p8 = pnand %p1028_p7, %p1022_p4 }
  0x52   :  { %v686_v25 = vld [vmem:[%s1244_s4] ss:$0 sm:$0xff]  ;;  %v915_v38 = vld [vmem:[#allocation7 + $0x98] sm:$0xff]   ;;  %v917_v39 = vld [vmem:[#allocation7 + $0xa0] sm:$0xff]  }
  0x53   :  { %v913_v37 = vld [vmem:[#allocation7 + $0x90] sm:$0xff]   ;;  %v919_v40 = vld [vmem:[#allocation7 + $0xa8] sm:$0xff]   ;;  %v922_v42 = vld [vmem:[#allocation8 + $0x38] sm:$0xff]  }
  0x54   :  { %785 = vmatpush3.bf16.msra.mxu0 %v893_v3  ;;  %805 = vmatpush3.bf16.msra.mxu1 %v902_v8  ;;  %v921_v41 = vld [vmem:[#allocation7 + $0xb0] sm:$0xff]   ;;  %v923_v43 = vld [vmem:[#allocation5] sm:$0xff]   ;;  %v925_v45 = vld [vmem:[#allocation7 + $0xc0] sm:$0xff]  }
  0x55   :  { %786 = vmatprep.subr.bf16.mxu0 %v1057_v0  ;;  %806 = vmatprep.subr.bf16.mxu1 %v1057_v0  ;;  %v924_v44 = vld [vmem:[#allocation7 + $0xb8] sm:$0xff]   ;;  %v926_v46 = vld [vmem:[#allocation7 + $0xc8] sm:$0xff]   ;;  %v927_v47 = vld [vmem:[#allocation7 + $0xd0] sm:$0xff]  }
  0x56   :  { %v928_v48 = vld [vmem:[#allocation7 + $0xd8] sm:$0xff]   ;;  %v929_v49 = vld [vmem:[#allocation7 + $0xe0] sm:$0xff]   ;;  %v697_v50 = vld [vmem:[%s1244_s4 + $0x1] ss:$0 sm:$0xff] }
  0x57   :  { %v930_v62 = vld [vmem:[#allocation7 + $0xe8] sm:$0xff]   ;;  %v931_v2 = vld [vmem:[#allocation7 + $0xf0] sm:$0xff]   ;;  %v932_v3 = vld [vmem:[#allocation7 + $0xf8] sm:$0xff]  }
  0x58   :  { %787 = vmatpush3.bf16.msra.mxu0 %v894_v5  ;;  %807 = vmatpush3.bf16.msra.mxu1 %v903_v10  ;;  %v724_v5 = vld [vmem:[%s1244_s4 + $0x2] ss:$0 sm:$0xff] }
  0x59   :  { %788 = vmatprep.subr.bf16.mxu0 %v1057_v0  ;;  %808 = vmatprep.subr.bf16.mxu1 %v1057_v0 }
  0x5c   :  { %789 = vmatpush3.bf16.msra.mxu0 %v895_v7  ;;  %809 = vmatpush3.bf16.msra.mxu1 %v904_v12 }
  0x5d   :  { %790 = vmatprep.subr.bf16.mxu0 %v1057_v0  ;;  %810 = vmatprep.subr.bf16.mxu1 %v1057_v0 }
  0x60   :  { %791 = vmatpush3.bf16.msra.mxu0 %v896_v9  ;;  %811 = vmatpush3.bf16.msra.mxu1 %v905_v14 }
  0x61   :  { %792 = vmatprep.subr.bf16.mxu0 %v1057_v0  ;;  %812 = vmatprep.subr.bf16.mxu1 %v1057_v0 }
  0x64   :  { %793 = vmatpush3.bf16.msra.mxu0 %v897_v11  ;;  %813 = vmatpush3.bf16.msra.mxu1 %v906_v16 }
  0x65   :  { %794 = vmatprep.subr.bf16.mxu0 %v1057_v0  ;;  %814 = vmatprep.subr.bf16.mxu1 %v1057_v0 }
  0x68   :  { %795 = vmatpush3.bf16.msra.mxu0 %v898_v13  ;;  %815 = vmatpush3.bf16.msra.mxu1 %v907_v17 }
  0x69   :  { %820 = vmatprep.subr.bf16.mxu0 %v1057_v0  ;;  %840 = vmatprep.subr.bf16.mxu1 %v1057_v0 }
  0x6b   :  { %797 = vmatmul.mubr.bf16.vlgmr.msra.gmra.mrb[0].mxu0 %v899_v15 }
  0x6c   :  { %836 = vmatprep.mubr.msk.bf16.mxu0 %vm1058_vm0, %v1057_v0  ;;  %821 = vmatpush3.bf16.msra.mxu0 %v908_v18 }
  0x6d   :  { %822 = vmatprep.subr.bf16.mxu0 %v1057_v0 }
  0x70   :  { %823 = vmatpush3.bf16.msra.mxu0 %v910_v19 }
  0x71   :  { %824 = vmatprep.subr.bf16.mxu0 %v1057_v0 }
  0x74   :  { %825 = vmatpush3.bf16.msra.mxu0 %v912_v20 }
  0x75   :  { %826 = vmatprep.subr.bf16.mxu0 %v1057_v0 }
  0x78   :  { %827 = vmatpush3.bf16.msra.mxu0 %v914_v21 }
  0x79   :  { %828 = vmatprep.subr.bf16.mxu0 %v1057_v0 }
  0x7c   :  { %829 = vmatpush3.bf16.msra.mxu0 %v916_v22 }
  0x7d   :  { %830 = vmatprep.subr.bf16.mxu0 %v1057_v0 }
  0x80   :  { %831 = vmatpush3.bf16.msra.mxu0 %v918_v23 }
  0x81   :  { %832 = vmatprep.subr.bf16.mxu0 %v1057_v0 }
  0x84   :  { %833 = vmatpush3.bf16.msra.mxu0 %v920_v24 }
  0x85   :  { %834 = vmatprep.subr.bf16.mxu0 %v1057_v0 }
  0x88   :  { %835 = vmatpush3.bf16.msra.mxu0 %v922_v42 }
  0x89   :  { %860 = vmatprep.subr.bf16.mxu0 %v1057_v0 }
  0x8b   :  { %837 = vmatmul.mubr.bf16.vlgmr.msra.gmra.mrb[4].mxu0 %v923_v43 }
  0x8c   :  { %876 = vmatprep.mubr.msk.bf16.mxu0 %vm1058_vm0, %v1057_v0  ;;  %861 = vmatpush3.bf16.msra.mxu0 %v925_v45 }
  0x8d   :  { %862 = vmatprep.subr.bf16.mxu0 %v1057_v0 }
  0x90   :  { %863 = vmatpush3.bf16.msra.mxu0 %v926_v46 }
  0x91   :  { %864 = vmatprep.subr.bf16.mxu0 %v1057_v0 }
  0x94   :  { %865 = vmatpush3.bf16.msra.mxu0 %v927_v47 }
  0x95   :  { %866 = vmatprep.subr.bf16.mxu0 %v1057_v0 }
  0x98   :  { %867 = vmatpush3.bf16.msra.mxu0 %v928_v48 }
  0x99   :  { %868 = vmatprep.subr.bf16.mxu0 %v1057_v0 }
  0x9c   :  { %869 = vmatpush3.bf16.msra.mxu0 %v929_v49 }
  0x9d   :  { %870 = vmatprep.subr.bf16.mxu0 %v1057_v0 }
  0xa0   :  { %871 = vmatpush3.bf16.msra.mxu0 %v930_v62 }
  0xa1   :  { %872 = vmatprep.subr.bf16.mxu0 %v1057_v0 }
  0xa4   :  { %873 = vmatpush3.bf16.msra.mxu0 %v931_v2 }
  0xa5   :  { %874 = vmatprep.subr.bf16.mxu0 %v1057_v0 }
  0xa8   :  { %875 = vmatpush3.bf16.msra.mxu0 %v932_v3 }
 0x13e   :  { %v190_v26 = vpop.f32.mrb[0].mxu0 }
 0x13f   :  { %v191_v27 = vadd.f32 %v686_v25, %v190_v26  ;;  %v798_v28 = vpop.f32.mrb[1].mxu0 }
 0x140   :  { %v193_v29 = vpop.f32.mrb[2].mxu0 }
 0x141   :  { %v194_v30 = vadd.f32 %v686_v25, %v193_v29  ;;  %v799_v31 = vpop.f32.mrb[3].mxu0  ;;  %v197_v32 = vmax.f32 %v191_v27, 0.0 }
 0x143   :  { %v198_v33 = vmax.f32 %v194_v30, 0.0 }
 0x145   :  { %v199_v35 = vpack.c.bf16 %v198_v33, %v197_v32 }
 0x147   :  { %817 = vmatmul.mubr.bf16.vlgmr.msra.gmra.mrb[0].mxu1 %v199_v35 }
 0x148   :  { %841 = vmatpush3.bf16.msra.mxu1 %v909_v34  ;;  %856 = vmatprep.mubr.msk.bf16.mxu1 %vm1058_vm0, %v1057_v0 }
 0x149   :  { %842 = vmatprep.subr.bf16.mxu1 %v1057_v0 }
 0x14c   :  { %843 = vmatpush3.bf16.msra.mxu1 %v911_v36 }
 0x14d   :  { %844 = vmatprep.subr.bf16.mxu1 %v1057_v0 }
 0x150   :  { %845 = vmatpush3.bf16.msra.mxu1 %v913_v37 }
 0x151   :  { %846 = vmatprep.subr.bf16.mxu1 %v1057_v0 }
 0x154   :  { %847 = vmatpush3.bf16.msra.mxu1 %v915_v38 }
 0x155   :  { %848 = vmatprep.subr.bf16.mxu1 %v1057_v0 }
 0x158   :  { %849 = vmatpush3.bf16.msra.mxu1 %v917_v39 }
 0x159   :  { %850 = vmatprep.subr.bf16.mxu1 %v1057_v0 }
 0x15c   :  { %851 = vmatpush3.bf16.msra.mxu1 %v919_v40 }
 0x15d   :  { %852 = vmatprep.subr.bf16.mxu1 %v1057_v0 }
 0x15e   :  { %v440_v60 = vpop.f32.mrb[4].mxu0 }
 0x15f   :  { %v838_v61 = vpop.f32.mrb[5].mxu0 }
 0x160   :  { %853 = vmatpush3.bf16.msra.mxu1 %v921_v41  ;;  %v443_v63 = vpop.f32.mrb[6].mxu0 }
 0x161   :  { %854 = vmatprep.subr.bf16.mxu1 %v1057_v0  ;;  %v839_v1 = vpop.f32.mrb[7].mxu0  ;;  %v726_v0 = vld [vmem:[%s1244_s4 + $0x3] ss:$0 sm:$0xff] }
 0x164   :  { %855 = vmatpush3.bf16.msra.mxu1 %v924_v44 }
 0x21a   :  { %v307_v51 = vpop.f32.mrb[0].mxu1 }
 0x21b   :  { %v308_v52 = vadd.f32 %v697_v50, %v307_v51  ;;  %v818_v53 = vpop.f32.mrb[1].mxu1 }
 0x21c   :  { %v310_v54 = vpop.f32.mrb[2].mxu1 }
 0x21d   :  { %v311_v55 = vadd.f32 %v697_v50, %v310_v54  ;;  %v819_v56 = vpop.f32.mrb[3].mxu1  ;;  %v314_v57 = vmax.f32 %v308_v52, 0.0 }
 0x21f   :  { %v315_v58 = vmax.f32 %v311_v55, 0.0 }
 0x221   :  { %v316_v59 = vpack.c.bf16 %v315_v58, %v314_v57 }
 0x223   :  { %857 = vmatmul.mubr.bf16.vlgmr.msra.gmra.mrb[4].mxu1 %v316_v59 }
 0x2f6   :  { %v529_v4 = vpop.f32.mrb[4].mxu1 }
 0x2f7   :  { %v530_v6 = vadd.f32 %v529_v4, %v440_v60  ;;  %v858_v7 = vpop.f32.mrb[5].mxu1 }
 0x2f8   :  { %v532_v8 = vpop.f32.mrb[6].mxu1 }
 0x2f9   :  { %v544_v9 = vadd.f32 %v724_v5, %v530_v6  ;;  %v533_v10 = vadd.f32 %v532_v8, %v443_v63  ;;  %v859_v11 = vpop.f32.mrb[7].mxu1 }
 0x2fb   :  { %v545_v12 = vadd.f32 %v724_v5, %v533_v10  ;;  %v546_v13 = vmax.f32 %v544_v9, 0.0 }
 0x2fd   :  { %v547_v14 = vmax.f32 %v545_v12, 0.0 }
 0x2ff   :  { %v548_v15 = vpack.c.bf16 %v547_v14, %v546_v13 }
 0x301   :  { %877 = vmatmul.mubr.bf16.vlgmr.msra.gmra.mrb[8].mxu0 %v548_v15 }
 0x3d4   :  { %v656_v16 = vpop.f32.mrb[8].mxu0 }
 0x3d5   :  { %v657_v17 = vadd.f32 %v726_v0, %v656_v16  ;;  %v878_v18 = vpop.f32.mrb[9].mxu0 }
 0x3d6   :  { %v659_v19 = vpop.f32.mrb[10].mxu0 }
 0x3d7   :  { %v663_v20 = vmax.f32 %v657_v17, 0.0  ;;  %v660_v21 = vadd.f32 %v726_v0, %v659_v19  ;;  %v879_v22 = vpop.f32.mrb[11].mxu0 }
 0x3d9   :  { %665 = vst [vmem:[#allocation10] sm:$0xff] %v663_v20  ;;  %v664_v23 = vmax.f32 %v660_v21, 0.0 }
 0x3db   :  { %666 = vst [vmem:[#allocation10 + $0x8] sm:$0xff] %v664_v23 }
 0x3dc   :  { %1032 = shalt.err (!%p1029_p8)
}
 0x3dd   :  { %s1033_s26 = scalar_lea.hbm %s1245_s5, 256 }
 0x3de   :  { %p1034_p9 = scmp.ne.s32.totalorder %s1245_s5, %s1033_s26  ;;  %p1037_p10 = scmp.lt.u32.totalorder %s1033_s26, %s1245_s5 }
 0x3e0   :  { %p1039_p11 = pnand %p1037_p10, %p1034_p9 }
 0x3e2   :  { %1042 = shalt.err (!%p1039_p11)
}
 0x3e3   :  { %s1060_s21 = smov 128   ;;  %s1061_s7 = smov 8  }
 0x3e4   :  { %678 = dma.vmem_to_hbm [thread:$0]  %s673_s23, 256, %s1245_s5, [#allocation4], %s1060_s21, %s1060_s21, %s1061_s7  }
 0x3e5   :  { %1049 = dma.done.wait [#allocation4], 256  }
 0x3e6   :  { %1050 = vsyncadd [#allocation4], 4294967040 }
 0x3e7   :  { %682 = vsyncpa [#allocation3], 1 }
 0x3e8   :  { %683 = vsyncpa [#allocation6], 1 }
 0x3e9   :  { %684 = vsyncpa [#allocation9], 1 }
 0x3ea   :  { %685 = vsyncpa [#allocation4], 1 }

// kernel: tpu_custom_call.1
= control target key start
LH: loop header
LB: loop body
LE: loop exit
PB: predicated region body
PF: predicated region fallthrough
CT: control target
= control target key end

     0   :  { %10 = vsyncpa [#allocation3], 0  ;;  %s1240_s0 = inlined_call_operand.hbm [shape: bf16[16,128], index: 0, kind: input, shape index: {}]   ;;  %s1241_s1 = inlined_call_operand.hbm [shape: bf16[16,128], index: 1, kind: input, shape index: {}]   ;;  %s1242_s2 = inlined_call_operand.hbm [shape: bf16[4,128,128], index: 2, kind: input, shape index: {}]   ;;  %s1243_s3 = inlined_call_operand.hbm [shape: bf16[1,128,128], index: 3, kind: input, shape index: {}]   ;;  %s1244_s4 = inlined_call_operand.vmem [shape: f32[4,1,128], index: 4, kind: input, shape index: {}]   ;;  %s1245_s5 = inlined_call_operand.hbm [shape: f32[16,128], index: 5, kind: output, shape index: {}]  }
   0x1   :  { %11 = vsyncpa [#allocation6], 0 }
   0x2   :  { %12 = vsyncpa [#allocation9], 0 }
   0x3   :  { %13 = vsyncpa [#allocation4], 0  ;;  %s1051_s18 = smov [#allocation5]   ;;  %s1052_s20 = smov [#allocation2]  }
   0x4   :  { %s31_s19 = sshll.u32 %s1051_s18, 4  ;;  %s19_s21 = sshll.u32 %s1052_s20, 4  ;;  %s32_s19 = int_to_ptr.vmem [resolvable:$true] %s31_s19  ;;  %s1092_s21 = int_to_ptr.vmem [resolvable:$true] %s19_s21 }
   0x5   :  { %s933_s24 = scalar_lea.hbm %s1241_s1, 128 }
   0x6   :  { %p934_p0 = scmp.ne.s32.totalorder %s1241_s1, %s933_s24  ;;  %p937_p1 = scmp.lt.u32.totalorder %s933_s24, %s1241_s1 }
   0x8   :  { %p939_p2 = pnand %p937_p1, %p934_p0 }
   0xa   :  { %942 = shalt.err (!%p939_p2)
}
   0xb   :  { %s943_s29 = scalar_lea.vmem %s32_s19, 128  ;;  %p948_p4 = scmp.lt.s32.totalorder %s32_s19, %s32_s19 }
   0xc   :  { %p944_p3 = scmp.ne.s32.totalorder %s32_s19, %s943_s29  ;;  %p949_p5 = scmp.lt.s32.totalorder %s943_s29, %s943_s29 }
   0xe   :  { %p950_p6 = por %p949_p5, %p948_p4 }
  0x10   :  { %p951_p7 = pnand %p950_p6, %p944_p3 }
  0x12   :  { %954 = shalt.err (!%p951_p7)
}
  0x13   :  { %s1053_s30 = smov 64   ;;  %s1054_s6 = smov 4  }
  0x14   :  { %37 = dma.hbm_to_vmem [thread:$0]  %s1241_s1, 128, %s32_s19, [#allocation6], %s1053_s30, %s1053_s30, %s1054_s6  }
  0x15   :  { %s955_s11 = scalar_lea.hbm %s1240_s0, 128 }
  0x16   :  { %p956_p8 = scmp.ne.s32.totalorder %s1240_s0, %s955_s11  ;;  %p959_p9 = scmp.lt.u32.totalorder %s955_s11, %s1240_s0 }
  0x18   :  { %p961_p10 = pnand %p959_p9, %p956_p8 }
  0x1a   :  { %964 = shalt.err (!%p961_p10)
}
  0x1b   :  { %s965_s16 = scalar_lea.vmem %s1092_s21, 128  ;;  %p970_p12 = scmp.lt.s32.totalorder %s1092_s21, %s1092_s21 }
  0x1c   :  { %p966_p11 = scmp.ne.s32.totalorder %s1092_s21, %s965_s16  ;;  %p971_p13 = scmp.lt.s32.totalorder %s965_s16, %s965_s16 }
  0x1e   :  { %p972_p0 = por %p971_p13, %p970_p12 }
  0x20   :  { %p973_p1 = pnand %p972_p0, %p966_p11 }
  0x22   :  { %976 = shalt.err (!%p973_p1)
}
  0x23   :  { %25 = dma.hbm_to_vmem [thread:$0]  %s1240_s0, 128, %s1092_s21, [#allocation3], %s1053_s30, %s1053_s30, %s1054_s6  }
  0x24   :  { %s1055_s18 = smov [#allocation7]   ;;  %s1056_s20 = smov [#allocation8]  }
  0x25   :  { %s43_s19 = sshll.u32 %s1055_s18, 4  ;;  %s55_s22 = sshll.u32 %s1056_s20, 4  ;;  %s44_s19 = int_to_ptr.vmem [resolvable:$true] %s43_s19  ;;  %s1129_s22 = int_to_ptr.vmem [resolvable:$true] %s55_s22 }
  0x26   :  { %s977_s25 = scalar_lea.hbm %s1242_s2, 4096 }
  0x27   :  { %p978_p2 = scmp.ne.s32.totalorder %s1242_s2, %s977_s25  ;;  %p981_p3 = scmp.lt.u32.totalorder %s977_s25, %s1242_s2 }
  0x29   :  { %p983_p4 = pnand %p981_p3, %p978_p2 }
  0x2b   :  { %986 = shalt.err (!%p983_p4)
}
  0x2c   :  { %s987_s0 = scalar_lea.vmem %s44_s19, 4096  ;;  %p992_p6 = scmp.lt.s32.totalorder %s44_s19, %s44_s19 }
  0x2d   :  { %p988_p5 = scmp.ne.s32.totalorder %s44_s19, %s987_s0  ;;  %p993_p7 = scmp.lt.s32.totalorder %s987_s0, %s987_s0 }
  0x2f   :  { %p994_p8 = por %p993_p7, %p992_p6 }
  0x31   :  { %p995_p9 = pnand %p994_p8, %p988_p5 }
  0x33   :  { %998 = shalt.err (!%p995_p9)
}
  0x34   :  { %49 = dma.hbm_to_vmem [thread:$0]  %s1242_s2, 4096, %s44_s19, [#allocation6], %s1053_s30, %s1053_s30, %s1054_s6  }
  0x35   :  { %s999_s10 = scalar_lea.hbm %s1243_s3, 1024 }
  0x36   :  { %p1000_p10 = scmp.ne.s32.totalorder %s1243_s3, %s999_s10  ;;  %p1003_p11 = scmp.lt.u32.totalorder %s999_s10, %s1243_s3 }
  0x38   :  { %p1005_p12 = pnand %p1003_p11, %p1000_p10 }
  0x3a   :  { %1008 = shalt.err (!%p1005_p12)
}
  0x3b   :  { %s1009_s15 = scalar_lea.vmem %s1129_s22, 1024  ;;  %p1014_p0 = scmp.lt.s32.totalorder %s1129_s22, %s1129_s22 }
  0x3c   :  { %p1010_p13 = scmp.ne.s32.totalorder %s1129_s22, %s1009_s15  ;;  %p1015_p1 = scmp.lt.s32.totalorder %s1009_s15, %s1009_s15 }
  0x3e   :  { %p1016_p2 = por %p1015_p1, %p1014_p0 }
  0x40   :  { %p1017_p3 = pnand %p1016_p2, %p1010_p13 }
  0x42   :  { %1020 = shalt.err (!%p1017_p3)
}
  0x43   :  { %61 = dma.hbm_to_vmem [thread:$0]  %s1243_s3, 1024, %s1129_s22, [#allocation9], %s1053_s30, %s1053_s30, %s1054_s6  }
  0x44   :  { %1043 = dma.done.wait [#allocation3], 128  }
  0x45   :  { %1044 = vsyncadd [#allocation3], 4294967168 }
  0x46   :  { %1045 = dma.done.wait [#allocation6], 4224  }
  0x47   :  { %1046 = vsyncadd [#allocation6], 4294963072 }
  0x48   :  { %1047 = dma.done.wait [#allocation9], 1024  }
  0x49   :  { %1048 = vsyncadd [#allocation9], 4294966272  ;;  %v1057_v0 = vmov 0.0   ;;  %vm1058_vm0 = vmmov 0   ;;  %v891_v1 = vld [vmem:[#allocation7] sm:$0xff]   ;;  %v892_v2 = vld [vmem:[#allocation7 + $0x8] sm:$0xff]  }
  0x4a   :  { %780 = vmatprep.subr.bf16.mxu0 %v1057_v0  ;;  %796 = vmatprep.mubr.msk.bf16.mxu0 %vm1058_vm0, %v1057_v0  ;;  %v893_v3 = vld [vmem:[#allocation7 + $0x10] sm:$0xff]   ;;  %v900_v4 = vld [vmem:[#allocation7 + $0x40] sm:$0xff]   ;;  %v894_v5 = vld [vmem:[#allocation7 + $0x18] sm:$0xff]   ;;  %s1059_s22 = smov [#allocation10]  }
  0x4b   :  { %800 = vmatprep.subr.bf16.mxu1 %v1057_v0  ;;  %816 = vmatprep.mubr.msk.bf16.mxu1 %vm1058_vm0, %v1057_v0  ;;  %v901_v6 = vld [vmem:[#allocation7 + $0x48] sm:$0xff]   ;;  %v895_v7 = vld [vmem:[#allocation7 + $0x20] sm:$0xff]   ;;  %v902_v8 = vld [vmem:[#allocation7 + $0x50] sm:$0xff]   ;;  %s672_s23 = sshll.u32 %s1059_s22, 4  ;;  %s673_s23 = int_to_ptr.vmem [resolvable:$true] %s672_s23 }
  0x4c   :  { %781 = vmatpush3.bf16.msra.mxu0 %v891_v1  ;;  %801 = vmatpush3.bf16.msra.mxu1 %v900_v4  ;;  %v896_v9 = vld [vmem:[#allocation7 + $0x28] sm:$0xff]   ;;  %v903_v10 = vld [vmem:[#allocation7 + $0x58] sm:$0xff]   ;;  %v897_v11 = vld [vmem:[#allocation7 + $0x30] sm:$0xff]   ;;  %s1021_s24 = scalar_lea.vmem %s673_s23, 256  ;;  %p1026_p5 = scmp.lt.s32.totalorder %s673_s23, %s673_s23 }
  0x4d   :  { %782 = vmatprep.subr.bf16.mxu0 %v1057_v0  ;;  %802 = vmatprep.subr.bf16.mxu1 %v1057_v0  ;;  %v904_v12 = vld [vmem:[#allocation7 + $0x60] sm:$0xff]   ;;  %v898_v13 = vld [vmem:[#allocation7 + $0x38] sm:$0xff]   ;;  %v905_v14 = vld [vmem:[#allocation7 + $0x68] sm:$0xff]   ;;  %p1022_p4 = scmp.ne.s32.totalorder %s673_s23, %s1021_s24  ;;  %p1027_p6 = scmp.lt.s32.totalorder %s1021_s24, %s1021_s24 }
  0x4e   :  { %v899_v15 = vld [vmem:[#allocation2] sm:$0xff]   ;;  %v907_v17 = vld [vmem:[#allocation7 + $0x78] sm:$0xff]   ;;  %v908_v18 = vld [vmem:[#allocation8] sm:$0xff]  }
  0x4f   :  { %v906_v16 = vld [vmem:[#allocation7 + $0x70] sm:$0xff]   ;;  %v910_v19 = vld [vmem:[#allocation8 + $0x8] sm:$0xff]   ;;  %v914_v21 = vld [vmem:[#allocation8 + $0x18] sm:$0xff]   ;;  %p1028_p7 = por %p1027_p6, %p1026_p5 }
  0x50   :  { %783 = vmatpush3.bf16.msra.mxu0 %v892_v2  ;;  %803 = vmatpush3.bf16.msra.mxu1 %v901_v6  ;;  %v912_v20 = vld [vmem:[#allocation8 + $0x10] sm:$0xff]   ;;  %v916_v22 = vld [vmem:[#allocation8 + $0x20] sm:$0xff]   ;;  %v918_v23 = vld [vmem:[#allocation8 + $0x28] sm:$0xff]  }
  0x51   :  { %784 = vmatprep.subr.bf16.mxu0 %v1057_v0  ;;  %804 = vmatprep.subr.bf16.mxu1 %v1057_v0  ;;  %v920_v24 = vld [vmem:[#allocation8 + $0x30] sm:$0xff]   ;;  %v909_v34 = vld [vmem:[#allocation7 + $0x80] sm:$0xff]   ;;  %v911_v36 = vld [vmem:[#allocation7 + $0x88] sm:$0xff]   ;;  %p1029_p8 = pnand %p1028_p7, %p1022_p4 }
  0x52   :  { %v686_v25 = vld [vmem:[%s1244_s4] ss:$0 sm:$0xff]  ;;  %v915_v38 = vld [vmem:[#allocation7 + $0x98] sm:$0xff]   ;;  %v917_v39 = vld [vmem:[#allocation7 + $0xa0] sm:$0xff]  }
  0x53   :  { %v913_v37 = vld [vmem:[#allocation7 + $0x90] sm:$0xff]   ;;  %v919_v40 = vld [vmem:[#allocation7 + $0xa8] sm:$0xff]   ;;  %v922_v42 = vld [vmem:[#allocation8 + $0x38] sm:$0xff]  }
  0x54   :  { %785 = vmatpush3.bf16.msra.mxu0 %v893_v3  ;;  %805 = vmatpush3.bf16.msra.mxu1 %v902_v8  ;;  %v921_v41 = vld [vmem:[#allocation7 + $0xb0] sm:$0xff]   ;;  %v923_v43 = vld [vmem:[#allocation5] sm:$0xff]   ;;  %v925_v45 = vld [vmem:[#allocation7 + $0xc0] sm:$0xff]  }
  0x55   :  { %786 = vmatprep.subr.bf16.mxu0 %v1057_v0  ;;  %806 = vmatprep.subr.bf16.mxu1 %v1057_v0  ;;  %v924_v44 = vld [vmem:[#allocation7 + $0xb8] sm:$0xff]   ;;  %v926_v46 = vld [vmem:[#allocation7 + $0xc8] sm:$0xff]   ;;  %v927_v47 = vld [vmem:[#allocation7 + $0xd0] sm:$0xff]  }
  0x56   :  { %v928_v48 = vld [vmem:[#allocation7 + $0xd8] sm:$0xff]   ;;  %v929_v49 = vld [vmem:[#allocation7 + $0xe0] sm:$0xff]   ;;  %v697_v50 = vld [vmem:[%s1244_s4 + $0x1] ss:$0 sm:$0xff] }
  0x57   :  { %v930_v62 = vld [vmem:[#allocation7 + $0xe8] sm:$0xff]   ;;  %v931_v2 = vld [vmem:[#allocation7 + $0xf0] sm:$0xff]   ;;  %v932_v3 = vld [vmem:[#allocation7 + $0xf8] sm:$0xff]  }
  0x58   :  { %787 = vmatpush3.bf16.msra.mxu0 %v894_v5  ;;  %807 = vmatpush3.bf16.msra.mxu1 %v903_v10  ;;  %v724_v5 = vld [vmem:[%s1244_s4 + $0x2] ss:$0 sm:$0xff] }
  0x59   :  { %788 = vmatprep.subr.bf16.mxu0 %v1057_v0  ;;  %808 = vmatprep.subr.bf16.mxu1 %v1057_v0 }
  0x5c   :  { %789 = vmatpush3.bf16.msra.mxu0 %v895_v7  ;;  %809 = vmatpush3.bf16.msra.mxu1 %v904_v12 }
  0x5d   :  { %790 = vmatprep.subr.bf16.mxu0 %v1057_v0  ;;  %810 = vmatprep.subr.bf16.mxu1 %v1057_v0 }
  0x60   :  { %791 = vmatpush3.bf16.msra.mxu0 %v896_v9  ;;  %811 = vmatpush3.bf16.msra.mxu1 %v905_v14 }
  0x61   :  { %792 = vmatprep.subr.bf16.mxu0 %v1057_v0  ;;  %812 = vmatprep.subr.bf16.mxu1 %v1057_v0 }
  0x64   :  { %793 = vmatpush3.bf16.msra.mxu0 %v897_v11  ;;  %813 = vmatpush3.bf16.msra.mxu1 %v906_v16 }
  0x65   :  { %794 = vmatprep.subr.bf16.mxu0 %v1057_v0  ;;  %814 = vmatprep.subr.bf16.mxu1 %v1057_v0 }
  0x68   :  { %795 = vmatpush3.bf16.msra.mxu0 %v898_v13  ;;  %815 = vmatpush3.bf16.msra.mxu1 %v907_v17 }
  0x69   :  { %820 = vmatprep.subr.bf16.mxu0 %v1057_v0  ;;  %840 = vmatprep.subr.bf16.mxu1 %v1057_v0 }
  0x6b   :  { %797 = vmatmul.mubr.bf16.vlgmr.msra.gmra.mrb[0].mxu0 %v899_v15 }
  0x6c   :  { %836 = vmatprep.mubr.msk.bf16.mxu0 %vm1058_vm0, %v1057_v0  ;;  %821 = vmatpush3.bf16.msra.mxu0 %v908_v18 }
  0x6d   :  { %822 = vmatprep.subr.bf16.mxu0 %v1057_v0 }
  0x70   :  { %823 = vmatpush3.bf16.msra.mxu0 %v910_v19 }
  0x71   :  { %824 = vmatprep.subr.bf16.mxu0 %v1057_v0 }
  0x74   :  { %825 = vmatpush3.bf16.msra.mxu0 %v912_v20 }
  0x75   :  { %826 = vmatprep.subr.bf16.mxu0 %v1057_v0 }
  0x78   :  { %827 = vmatpush3.bf16.msra.mxu0 %v914_v21 }
  0x79   :  { %828 = vmatprep.subr.bf16.mxu0 %v1057_v0 }
  0x7c   :  { %829 = vmatpush3.bf16.msra.mxu0 %v916_v22 }
  0x7d   :  { %830 = vmatprep.subr.bf16.mxu0 %v1057_v0 }
  0x80   :  { %831 = vmatpush3.bf16.msra.mxu0 %v918_v23 }
  0x81   :  { %832 = vmatprep.subr.bf16.mxu0 %v1057_v0 }
  0x84   :  { %833 = vmatpush3.bf16.msra.mxu0 %v920_v24 }
  0x85   :  { %834 = vmatprep.subr.bf16.mxu0 %v1057_v0 }
  0x88   :  { %835 = vmatpush3.bf16.msra.mxu0 %v922_v42 }
  0x89   :  { %860 = vmatprep.subr.bf16.mxu0 %v1057_v0 }
  0x8b   :  { %837 = vmatmul.mubr.bf16.vlgmr.msra.gmra.mrb[4].mxu0 %v923_v43 }
  0x8c   :  { %876 = vmatprep.mubr.msk.bf16.mxu0 %vm1058_vm0, %v1057_v0  ;;  %861 = vmatpush3.bf16.msra.mxu0 %v925_v45 }
  0x8d   :  { %862 = vmatprep.subr.bf16.mxu0 %v1057_v0 }
  0x90   :  { %863 = vmatpush3.bf16.msra.mxu0 %v926_v46 }
  0x91   :  { %864 = vmatprep.subr.bf16.mxu0 %v1057_v0 }
  0x94   :  { %865 = vmatpush3.bf16.msra.mxu0 %v927_v47 }
  0x95   :  { %866 = vmatprep.subr.bf16.mxu0 %v1057_v0 }
  0x98   :  { %867 = vmatpush3.bf16.msra.mxu0 %v928_v48 }
  0x99   :  { %868 = vmatprep.subr.bf16.mxu0 %v1057_v0 }
  0x9c   :  { %869 = vmatpush3.bf16.msra.mxu0 %v929_v49 }
  0x9d   :  { %870 = vmatprep.subr.bf16.mxu0 %v1057_v0 }
  0xa0   :  { %871 = vmatpush3.bf16.msra.mxu0 %v930_v62 }
  0xa1   :  { %872 = vmatprep.subr.bf16.mxu0 %v1057_v0 }
  0xa4   :  { %873 = vmatpush3.bf16.msra.mxu0 %v931_v2 }
  0xa5   :  { %874 = vmatprep.subr.bf16.mxu0 %v1057_v0 }
  0xa8   :  { %875 = vmatpush3.bf16.msra.mxu0 %v932_v3 }
 0x13e   :  { %v190_v26 = vpop.f32.mrb[0].mxu0 }
 0x13f   :  { %v191_v27 = vadd.f32 %v686_v25, %v190_v26  ;;  %v798_v28 = vpop.f32.mrb[1].mxu0 }
 0x140   :  { %v193_v29 = vpop.f32.mrb[2].mxu0 }
 0x141   :  { %v194_v30 = vadd.f32 %v686_v25, %v193_v29  ;;  %v799_v31 = vpop.f32.mrb[3].mxu0  ;;  %v197_v32 = vmax.f32 %v191_v27, 0.0 }
 0x143   :  { %v198_v33 = vmax.f32 %v194_v30, 0.0 }
 0x145   :  { %v199_v35 = vpack.c.bf16 %v198_v33, %v197_v32 }
 0x147   :  { %817 = vmatmul.mubr.bf16.vlgmr.msra.gmra.mrb[0].mxu1 %v199_v35 }
 0x148   :  { %841 = vmatpush3.bf16.msra.mxu1 %v909_v34  ;;  %856 = vmatprep.mubr.msk.bf16.mxu1 %vm1058_vm0, %v1057_v0 }
 0x149   :  { %842 = vmatprep.subr.bf16.mxu1 %v1057_v0 }
 0x14c   :  { %843 = vmatpush3.bf16.msra.mxu1 %v911_v36 }
 0x14d   :  { %844 = vmatprep.subr.bf16.mxu1 %v1057_v0 }
 0x150   :  { %845 = vmatpush3.bf16.msra.mxu1 %v913_v37 }
 0x151   :  { %846 = vmatprep.subr.bf16.mxu1 %v1057_v0 }
 0x154   :  { %847 = vmatpush3.bf16.msra.mxu1 %v915_v38 }
 0x155   :  { %848 = vmatprep.subr.bf16.mxu1 %v1057_v0 }
 0x158   :  { %849 = vmatpush3.bf16.msra.mxu1 %v917_v39 }
 0x159   :  { %850 = vmatprep.subr.bf16.mxu1 %v1057_v0 }
 0x15c   :  { %851 = vmatpush3.bf16.msra.mxu1 %v919_v40 }
 0x15d   :  { %852 = vmatprep.subr.bf16.mxu1 %v1057_v0 }
 0x15e   :  { %v440_v60 = vpop.f32.mrb[4].mxu0 }
 0x15f   :  { %v838_v61 = vpop.f32.mrb[5].mxu0 }
 0x160   :  { %853 = vmatpush3.bf16.msra.mxu1 %v921_v41  ;;  %v443_v63 = vpop.f32.mrb[6].mxu0 }
 0x161   :  { %854 = vmatprep.subr.bf16.mxu1 %v1057_v0  ;;  %v839_v1 = vpop.f32.mrb[7].mxu0  ;;  %v726_v0 = vld [vmem:[%s1244_s4 + $0x3] ss:$0 sm:$0xff] }
 0x164   :  { %855 = vmatpush3.bf16.msra.mxu1 %v924_v44 }
 0x21a   :  { %v307_v51 = vpop.f32.mrb[0].mxu1 }
 0x21b   :  { %v308_v52 = vadd.f32 %v697_v50, %v307_v51  ;;  %v818_v53 = vpop.f32.mrb[1].mxu1 }
 0x21c   :  { %v310_v54 = vpop.f32.mrb[2].mxu1 }
 0x21d   :  { %v311_v55 = vadd.f32 %v697_v50, %v310_v54  ;;  %v819_v56 = vpop.f32.mrb[3].mxu1  ;;  %v314_v57 = vmax.f32 %v308_v52, 0.0 }
 0x21f   :  { %v315_v58 = vmax.f32 %v311_v55, 0.0 }
 0x221   :  { %v316_v59 = vpack.c.bf16 %v315_v58, %v314_v57 }
 0x223   :  { %857 = vmatmul.mubr.bf16.vlgmr.msra.gmra.mrb[4].mxu1 %v316_v59 }
 0x2f6   :  { %v529_v4 = vpop.f32.mrb[4].mxu1 }
 0x2f7   :  { %v530_v6 = vadd.f32 %v529_v4, %v440_v60  ;;  %v858_v7 = vpop.f32.mrb[5].mxu1 }
 0x2f8   :  { %v532_v8 = vpop.f32.mrb[6].mxu1 }
 0x2f9   :  { %v544_v9 = vadd.f32 %v724_v5, %v530_v6  ;;  %v533_v10 = vadd.f32 %v532_v8, %v443_v63  ;;  %v859_v11 = vpop.f32.mrb[7].mxu1 }
 0x2fb   :  { %v545_v12 = vadd.f32 %v724_v5, %v533_v10  ;;  %v546_v13 = vmax.f32 %v544_v9, 0.0 }
 0x2fd   :  { %v547_v14 = vmax.f32 %v545_v12, 0.0 }
 0x2ff   :  { %v548_v15 = vpack.c.bf16 %v547_v14, %v546_v13 }
 0x301   :  { %877 = vmatmul.mubr.bf16.vlgmr.msra.gmra.mrb[8].mxu0 %v548_v15 }
 0x3d4   :  { %v656_v16 = vpop.f32.mrb[8].mxu0 }
 0x3d5   :  { %v657_v17 = vadd.f32 %v726_v0, %v656_v16  ;;  %v878_v18 = vpop.f32.mrb[9].mxu0 }
 0x3d6   :  { %v659_v19 = vpop.f32.mrb[10].mxu0 }
 0x3d7   :  { %v663_v20 = vmax.f32 %v657_v17, 0.0  ;;  %v660_v21 = vadd.f32 %v726_v0, %v659_v19  ;;  %v879_v22 = vpop.f32.mrb[11].mxu0 }
 0x3d9   :  { %665 = vst [vmem:[#allocation10] sm:$0xff] %v663_v20  ;;  %v664_v23 = vmax.f32 %v660_v21, 0.0 }
 0x3db   :  { %666 = vst [vmem:[#allocation10 + $0x8] sm:$0xff] %v664_v23 }
 0x3dc   :  { %1032 = shalt.err (!%p1029_p8)
}
 0x3dd   :  { %s1033_s26 = scalar_lea.hbm %s1245_s5, 256 }
 0x3de   :  { %p1034_p9 = scmp.ne.s32.totalorder %s1245_s5, %s1033_s26  ;;  %p1037_p10 = scmp.lt.u32.totalorder %s1033_s26, %s1245_s5 }
 0x3e0   :  { %p1039_p11 = pnand %p1037_p10, %p1034_p9 }
 0x3e2   :  { %1042 = shalt.err (!%p1039_p11)
}
 0x3e3   :  { %s1060_s21 = smov 128   ;;  %s1061_s7 = smov 8  }
 0x3e4   :  { %678 = dma.vmem_to_hbm [thread:$0]  %s673_s23, 256, %s1245_s5, [#allocation4], %s1060_s21, %s1060_s21, %s1061_s7  }
 0x3e5   :  { %1049 = dma.done.wait [#allocation4], 256  }
 0x3e6   :  { %1050 = vsyncadd [#allocation4], 4294967040 }
 0x3e7   :  { %682 = vsyncpa [#allocation3], 1 }
 0x3e8   :  { %683 = vsyncpa [#allocation6], 1 }
 0x3e9   :  { %684 = vsyncpa [#allocation9], 1 }
 0x3ea   :  { %685 = vsyncpa [#allocation4], 1 }

</bundles_post_ra>
